<compile_context>
chip_gen: v7x
topology: tpu7x:2x2x1
jax: 0.10.0
libtpu: 0.0.40
codegen_flags: <defaults>
</compile_context>

<pallas_src>
import functools

import jax
import jax.numpy as jnp
from jax.experimental import pallas as pl
from jax.experimental.pallas import tpu as pltpu


def _int8_linear_kernel(x_ref, w_ref, s_ref, *rest, has_bias):
    # x_ref: (tm, tk) activations (bf16/f32)
    # w_ref: (tn, tk) int8 weight tile
    # s_ref: (1, tn)  per-out-channel scales
    # b_ref: (1, tn)  bias tile (only when has_bias)
    # o_ref: (tm, tn) output tile
    # acc_ref: (tm, tn) f32 accumulator scratch (resident across K axis)
    if has_bias:
        b_ref, o_ref, acc_ref = rest
    else:
        b_ref = None
        o_ref, acc_ref = rest

    k = pl.program_id(2)

    @pl.when(k == 0)
    def _init():
        acc_ref[...] = jnp.zeros_like(acc_ref)

    x = x_ref[...]
    w = w_ref[...].astype(x.dtype)  # per-tile int8 -> activation dtype (weight.to(input.dtype))
    acc_ref[...] += jax.lax.dot_general(
        x, w,
        dimension_numbers=(((1,), (1,)), ((), ())),  # x @ w.T -> (tm, tn)
        preferred_element_type=jnp.float32,
    )

    @pl.when(k == pl.num_programs(2) - 1)
    def _epilogue():
        out = acc_ref[...] * s_ref[...].astype(jnp.float32)
        if b_ref is not None:
            out = out + b_ref[...].astype(jnp.float32)
        o_ref[...] = out.astype(o_ref.dtype)
        # TODO(synk): optional v6e fast path — quantize x tile to int8 and use
        # the native int8 MXU (numerics change, so keep opt-in).


def _round_up(x, m):
    return ((x + m - 1) // m) * m


@functools.partial(jax.jit, static_argnames=("block_m", "block_n", "block_k"))
def int8_linear(x, weight, scales, bias=None, *,
                block_m=256, block_n=256, block_k=512):
    """Pallas Int8Linear forward.

    x:      (..., in_features)  bf16 (or f32)
    weight: (out_features, in_features) int8
    scales: (out_features,) bf16
    bias:   optional (out_features,) bf16
    returns (..., out_features) in x.dtype
    """
    orig_shape = x.shape
    out_features, in_features = weight.shape
    x2 = x.reshape(-1, in_features)
    m = x2.shape[0]

    # Tile sizes: clamp M tile to the (16-aligned) batch size; fall back to the
    # full dimension when N/K are not multiples of the requested tile (small
    # shapes stay legal as full-extent blocks; real LLM layers use 256/512).
    tm = min(block_m, _round_up(m, 16))
    tn = block_n if out_features % block_n == 0 else out_features
    tk = block_k if in_features % block_k == 0 else in_features

    m_pad = _round_up(m, tm)
    if m_pad != m:
        x2 = jnp.pad(x2, ((0, m_pad - m), (0, 0)))

    has_bias = bias is not None
    scales2 = scales.reshape(1, out_features)

    grid = (m_pad // tm, out_features // tn, in_features // tk)

    in_specs = [
        pl.BlockSpec((tm, tk), lambda i, j, k: (i, k)),   # activations
        pl.BlockSpec((tn, tk), lambda i, j, k: (j, k)),   # int8 weight tile
        pl.BlockSpec((1, tn), lambda i, j, k: (0, j)),    # scales
    ]
    inputs = [x2, weight, scales2]
    if has_bias:
        in_specs.append(pl.BlockSpec((1, tn), lambda i, j, k: (0, j)))
        inputs.append(bias.reshape(1, out_features))

    out2 = pl.pallas_call(
        functools.partial(_int8_linear_kernel, has_bias=has_bias),
        out_shape=jax.ShapeDtypeStruct((m_pad, out_features), x.dtype),
        grid_spec=pltpu.PrefetchScalarGridSpec(
            num_scalar_prefetch=0,
            grid=grid,
            in_specs=in_specs,
            out_specs=pl.BlockSpec((tm, tn), lambda i, j, k: (i, j)),
            scratch_shapes=[pltpu.VMEM((tm, tn), jnp.float32)],
        ),
        compiler_params=pltpu.CompilerParams(
            dimension_semantics=("parallel", "parallel", "arbitrary"),
        ),
    )(*inputs)

    out2 = out2[:m]
    return out2.reshape(*orig_shape[:-1], out_features)


def _reference(x, weight, scales, bias=None):
    acc = jnp.einsum(
        "...k,nk->...n",
        x.astype(jnp.float32),
        weight.astype(jnp.float32),
    )
    out = acc * scales.astype(jnp.float32)
    if bias is not None:
        out = out + bias.astype(jnp.float32)
    return out.astype(x.dtype)


if __name__ == "__main__":
    key = jax.random.PRNGKey(0)
    k_x, k_w, k_s, k_b = jax.random.split(key, 4)

    # Small shapes that still exercise the K tiling (2 K steps with block_k=512)
    # and the M-padding path (m=16 -> tm=16).
    batch, seq, in_features, out_features = 2, 8, 1024, 256

    x = jax.random.normal(k_x, (batch, seq, in_features), dtype=jnp.float32).astype(jnp.bfloat16)
    weight = jax.random.randint(
        k_w, (out_features, in_features), -128, 128, dtype=jnp.int32
    ).astype(jnp.int8)
    scales = (jax.random.uniform(k_s, (out_features,), dtype=jnp.float32) * 0.05 + 0.01).astype(jnp.bfloat16)
    bias = jax.random.normal(k_b, (out_features,), dtype=jnp.float32).astype(jnp.bfloat16)

    # With bias
    out = int8_linear(x, weight, scales, bias)
    jax.block_until_ready(out)
    ref = _reference(x, weight, scales, bias)
    assert out.shape == (batch, seq, out_features)
    assert out.dtype == x.dtype
    assert jnp.allclose(out.astype(jnp.float32), ref.astype(jnp.float32), atol=1.0, rtol=2e-2), (
        jnp.max(jnp.abs(out.astype(jnp.float32) - ref.astype(jnp.float32))))

    # Without bias (bias=None path of the module)
    out_nb = int8_linear(x, weight, scales, None)
    jax.block_until_ready(out_nb)
    ref_nb = _reference(x, weight, scales, None)
    assert jnp.allclose(out_nb.astype(jnp.float32), ref_nb.astype(jnp.float32), atol=1.0, rtol=2e-2)

    print("KERNEL_OK")
</pallas_src>

<mosaic_0001>
module attributes {stable_mosaic.version = 11 : i64} {
  func.func @_int8_linear_kernel(%arg0: i32, %arg1: i32, %arg2: i32, %arg3: memref<16x512xbf16, #tpu.memory_space<vmem>>, %arg4: memref<256x512xi8, #tpu.memory_space<vmem>>, %arg5: memref<1x256xbf16, #tpu.memory_space<vmem>>, %arg6: memref<1x256xbf16, #tpu.memory_space<vmem>>, %arg7: memref<16x256xbf16, #tpu.memory_space<vmem>>, %arg8: memref<16x256xf32, #tpu.memory_space<vmem>>) attributes {dimension_semantics = [#tpu.dimension_semantics<parallel>, #tpu.dimension_semantics<parallel>, #tpu.dimension_semantics<arbitrary>], iteration_bounds = array<i64: 1, 1, 2>, scalar_prefetch = 0 : i64, scratch_operands = 1 : i64, tpu.core_type = #tpu.core_type<tc>, window_params = [{transform_indices = @transform_0, window_bounds = array<i64: 16, 512>}, {transform_indices = @transform_1, window_bounds = array<i64: 256, 512>}, {transform_indices = @transform_2, window_bounds = array<i64: 1, 256>}, {transform_indices = @transform_3, window_bounds = array<i64: 1, 256>}, {transform_indices = @transform_4, window_bounds = array<i64: 16, 256>}]} {
    %c0_i32 = arith.constant 0 : i32
    %0 = arith.cmpi eq, %arg2, %c0_i32 : i32
    %1 = arith.extui %0 : i1 to i32
    %c0_i32_0 = arith.constant 0 : i32
    %2 = arith.cmpi ne, %1, %c0_i32_0 : i32
    scf.if %2 {
      %cst_9 = arith.constant 0.000000e+00 : f32
      %13 = vector.broadcast %cst_9 : f32 to vector<16x256xf32>
      %c0_10 = arith.constant 0 : index
      %c0_11 = arith.constant 0 : index
      %14 = vector.load %arg8[%c0_10, %c0_11] : memref<16x256xf32, #tpu.memory_space<vmem>>, vector<16x256xf32>
      tpu.vector_store %arg8[%c0_10, %c0_11], %13 {strides = array<i32>} : memref<16x256xf32, #tpu.memory_space<vmem>>, vector<16x256xf32>,
    } else {
    }
    %c0 = arith.constant 0 : index
    %c0_1 = arith.constant 0 : index
    %3 = vector.load %arg3[%c0, %c0_1] : memref<16x512xbf16, #tpu.memory_space<vmem>>, vector<16x512xbf16>
    %c0_2 = arith.constant 0 : index
    %c0_3 = arith.constant 0 : index
    %4 = vector.load %arg4[%c0_2, %c0_3] : memref<256x512xi8, #tpu.memory_space<vmem>>, vector<256x512xi8>
    %5 = arith.sitofp %4 : vector<256x512xi8> to vector<256x512xbf16>
    %c0_4 = arith.constant 0 : index
    %c0_5 = arith.constant 0 : index
    %6 = vector.load %arg8[%c0_4, %c0_5] : memref<16x256xf32, #tpu.memory_space<vmem>>, vector<16x256xf32>
    %cst = arith.constant dense<0.000000e+00> : vector<16x256xf32>
    %7 = tpu.matmul %3, %5, %cst {dimension_numbers = #tpu.dot_dimension_numbers<[1], [1], [0], [0], [0, 0, 1, 0], [], []>} : vector<16x512xbf16>, vector<256x512xbf16>, vector<16x256xf32> -> vector<16x256xf32>
    %8 = arith.addf %6, %7 : vector<16x256xf32>
    %c0_6 = arith.constant 0 : index
    %c0_7 = arith.constant 0 : index
    %9 = vector.load %arg8[%c0_6, %c0_7] : memref<16x256xf32, #tpu.memory_space<vmem>>, vector<16x256xf32>
    tpu.vector_store %arg8[%c0_6, %c0_7], %8 {strides = array<i32>} : memref<16x256xf32, #tpu.memory_space<vmem>>, vector<16x256xf32>,
    %c1_i32 = arith.constant 1 : i32
    %10 = arith.cmpi eq, %arg2, %c1_i32 : i32
    %11 = arith.extui %10 : i1 to i32
    %c0_i32_8 = arith.constant 0 : i32
    %12 = arith.cmpi ne, %11, %c0_i32_8 : i32
    scf.if %12 {
      %c0_9 = arith.constant 0 : index
      %c0_10 = arith.constant 0 : index
      %13 = vector.load %arg8[%c0_9, %c0_10] : memref<16x256xf32, #tpu.memory_space<vmem>>, vector<16x256xf32>
      %c0_11 = arith.constant 0 : index
      %c0_12 = arith.constant 0 : index
      %14 = vector.load %arg5[%c0_11, %c0_12] : memref<1x256xbf16, #tpu.memory_space<vmem>>, vector<1x256xbf16>
      %15 = arith.extf %14 : vector<1x256xbf16> to vector<1x256xf32>
      %16 = vector.broadcast %15 : vector<1x256xf32> to vector<16x256xf32>
      %17 = arith.mulf %13, %16 : vector<16x256xf32>
      %c0_13 = arith.constant 0 : index
      %c0_14 = arith.constant 0 : index
      %18 = vector.load %arg6[%c0_13, %c0_14] : memref<1x256xbf16, #tpu.memory_space<vmem>>, vector<1x256xbf16>
      %19 = arith.extf %18 : vector<1x256xbf16> to vector<1x256xf32>
      %20 = vector.broadcast %19 : vector<1x256xf32> to vector<16x256xf32>
      %21 = arith.addf %17, %20 : vector<16x256xf32>
      %22 = arith.truncf %21 : vector<16x256xf32> to vector<16x256xbf16>
      %c0_15 = arith.constant 0 : index
      %c0_16 = arith.constant 0 : index
      %23 = vector.load %arg7[%c0_15, %c0_16] : memref<16x256xbf16, #tpu.memory_space<vmem>>, vector<16x256xbf16>
      tpu.vector_store %arg7[%c0_15, %c0_16], %22 {strides = array<i32>} : memref<16x256xbf16, #tpu.memory_space<vmem>>, vector<16x256xbf16>,
    } else {
    }
    return
  }
  func.func @transform_0(%arg0: i32, %arg1: i32, %arg2: i32) -> (i32, i32) {
    %c0_i32 = arith.constant 0 : i32
    return %arg0, %arg2 : i32, i32
  }
  func.func @transform_1(%arg0: i32, %arg1: i32, %arg2: i32) -> (i32, i32) {
    %c0_i32 = arith.constant 0 : i32
    return %arg1, %arg2 : i32, i32
  }
  func.func @transform_2(%arg0: i32, %arg1: i32, %arg2: i32) -> (i32, i32) {
    %c0_i32 = arith.constant 0 : i32
    %c0_i32_0 = arith.constant 0 : i32
    return %c0_i32, %arg1 : i32, i32
  }
  func.func @transform_3(%arg0: i32, %arg1: i32, %arg2: i32) -> (i32, i32) {
    %c0_i32 = arith.constant 0 : i32
    %c0_i32_0 = arith.constant 0 : i32
    return %c0_i32, %arg1 : i32, i32
  }
  func.func @transform_4(%arg0: i32, %arg1: i32, %arg2: i32) -> (i32, i32) {
    %c0_i32 = arith.constant 0 : i32
    return %arg0, %arg1 : i32, i32
  }
}

</mosaic_0001>

<bundles_post_ra>
// kernel: int8_linear.1
= control target key start
LH: loop header
LB: loop body
LE: loop exit
PB: predicated region body
PF: predicated region fallthrough
CT: control target
= control target key end

     0   :  { %9 = vsyncpa [#allocation4], 0  ;;  %s1303_s0 = inlined_call_operand.hbm [shape: bf16[16,1024], index: 0, kind: input, shape index: {}]   ;;  %s1304_s1 = inlined_call_operand.hbm [shape: s8[256,1024], index: 1, kind: input, shape index: {}]   ;;  %s1305_s2 = inlined_call_operand.vmem [shape: bf16[1,256], index: 2, kind: input, shape index: {}]   ;;  %s1306_s3 = inlined_call_operand.vmem [shape: bf16[1,256], index: 3, kind: input, shape index: {}]   ;;  %s1307_s4 = inlined_call_operand.hbm [shape: bf16[16,256], index: 4, kind: output, shape index: {}]  }
   0x1   :  { %11 = vsyncpa [#allocation4 + $0x1], 0 }
   0x2   :  { %12 = vsyncpa [#allocation7], 0 }
   0x3   :  { %14 = vsyncpa [#allocation7 + $0x1], 0 }
   0x4   :  { %15 = vsyncpa [#allocation5], 0  ;;  %s1054_s15 = smov 0   ;;  %s1056_s16 = smov 0  }
   0x5   :  { %s1058_s17 = smov 0   ;;  %s1060_s18 = smov 0  }
   0x6   :  { %s1062_s19 = smov 0   ;;  %s1064_s20 = smov 0  }
   0x7 LB: > { %s757_s21 = sadd.s32 4294967295, %s1016_s20   ;;  %s33_s22 = sadd.s32 1, %s1012_s19  ;;  %s1016_s20 = sphi %s1064_s20, %s21_s20   ;;  %s1012_s19 = sphi %s1062_s19, %s1320_s19   ;;  %s1008_s18 = sphi %s1060_s18, %s1319_s18   ;;  %s1004_s17 = sphi %s1058_s17, %s1318_s17   ;;  %s1000_s16 = sphi %s1056_s16, %s1317_s16   ;;  %s996_s15 = sphi %s1054_s15, %s1316_s15  }
   0x8   : > { %p34_p0 = scmp.ge.s32.totalorder %s33_s22, 2  ;;  %s49_s23 = sadd.s32 1, %s1004_s17 }
   0x9   : > { %p56_p1 = scmp.ne.s32.totalorder %s1004_s17, %s1000_s16  ;;  %p57_p2 = scmp.eq.s32.totalorder %s1016_s20, 0 }
   0xa   : > { %s1322_s22 = smov (%p34_p0, %s33_s22), 0  ;;  %p62_p4 = scmp.ne.s32.totalorder %s1000_s16, %s996_s15 }
   0xb   : > { %p1090_p3 = por %p57_p2, %p56_p1  ;;  %s45_s25 = ssub.s32 %s1012_s19, %s1322_s22 }
   0xc   : > { %p63_p5 = scmp.eq.s32.totalorder %s757_s21, 0  ;;  %p47_p6 = scmp.eq.s32.totalorder %s45_s25, 0 }
   0xd   : > { %p806_p8 = scmp.lt.s32.totalorder %s1016_s20, 2  ;;  %s1108_s28 = sand.u32 1, %s1004_s17  }
   0xe   : > { %p1099_p7 = por %p63_p5, %p62_p4  ;;  %s783_s29 = sshll.u32 %s1012_s19, 8 }
   0xf   : > { %s1105_s27 = scalar_select %p47_p6, %s1004_s17, %s49_s23  }
  0x10   : > { %s1310_s26 = scalar_select %p1099_p7, 1, 0 }
  0x11   : > { %s762_s30 = sshll.u32 %s1108_s28, 5  ;;  %s1115_s7 = scalar_lea.hbm %s1303_s0, %s783_s29 }
  0x12   : > { %s214_s8 = scalar_lea.vmem [#allocation3], %s762_s30  ;;  %p1119_p9 = pnand %p806_p8, %p1090_p3 }
  0x13   : > { %s224_s9 = sshll.u32 %s214_s8, 4  ;;  %s211_s11 = scalar_lea.sflag [#allocation4], %s1108_s28  ;;  %s1123_s9 = int_to_ptr.vmem [resolvable:$true] %s224_s9 }
  0x14   : > { %s872_s12 = scalar_lea.hbm %s1115_s7, 512  ;;  %p874_p12 = pneg %p1119_p9 }
  0x15   : > { %p873_p11 = scmp.ne.s32.totalorder %s1115_s7, %s872_s12  ;;  %s877_s15 = scalar_lea.hbm %s1303_s0, 1024 }
  0x16   : > { %p878_p1 = scmp.lt.u32.totalorder %s1115_s7, %s1303_s0  ;;  %p879_p2 = scmp.lt.u32.totalorder %s877_s15, %s872_s12 }
  0x17   : > { %p875_p13 = pnand %p874_p12, %p873_p11  ;;  %p881_p4 = scmp.lt.u32.totalorder %s872_s12, %s1115_s7 }
  0x18   : > { %p880_p3 = por %p879_p2, %p878_p1 }
  0x19   : > { %p876_p0 = pneg %p875_p13 }
  0x1a   : > { %p882_p5 = por %p881_p4, %p880_p3 }
  0x1c   : > { %p883_p6 = pnand %p882_p5, %p876_p0 }
  0x1e   : > { %886 = shalt.err (!%p883_p6)
}
  0x1f   : > { %s887_s25 = scalar_lea.vmem %s1123_s9, 512  ;;  %s1018_s29 = smov [#allocation3]  }
  0x20   : > { %p888_p8 = scmp.ne.s32.totalorder %s1123_s9, %s887_s25  ;;  %s892_s30 = sshll.u32 %s1018_s29, 4  ;;  %s893_s30 = int_to_ptr.vmem [resolvable:$false] %s892_s30 }
  0x21   : > { %s894_s5 = scalar_lea.vmem %s893_s30, 1024  ;;  %p895_p10 = scmp.lt.s32.totalorder %s1123_s9, %s893_s30 }
  0x22   : > { %p890_p11 = pnand %p888_p8, %p874_p12  ;;  %p896_p1 = scmp.lt.s32.totalorder %s894_s5, %s887_s25 }
  0x24   : > { %p891_p13 = pneg %p890_p11  ;;  %p897_p2 = por %p896_p1, %p895_p10 }
  0x26   : > { %p898_p3 = pnand %p897_p2, %p891_p13 }
  0x28   : > { %901 = shalt.err (!%p898_p3)
}
  0x29   : > { %s1019_s6 = smov 512   ;;  %s1020_s8 = smov 256  }
  0x2a   : > { %s1021_s12 = smov 16   ;;  %p256_p10 = scmp.lt.s32.totalorder %s1016_s20, 3 }
  0x2b   : > { %802 = dma.hbm_to_vmem [thread:$0]  (!%p1119_p9), %s1115_s7, 512, %s1123_s9, %s211_s11, %s1019_s6, %s1020_s8, %s1021_s12  }
  0x2c   : > { %s765_s13 = sshll.u32 %s1108_s28, 8  ;;  %s784_s14 = sshll.u32 %s1012_s19, 9 }
  0x2d   : > { %p1312_p0 = scmp.ge.s32.totalorder %s1016_s20, 1  ;;  %s1167_s25 = scalar_lea.hbm %s1304_s1, %s784_s14 }
  0x2e   : > { %s238_s29 = scalar_lea.vmem [#allocation6], %s765_s13  ;;  %s235_s7 = scalar_lea.sflag [#allocation7], %s1108_s28 }
  0x2f   : > { %p1160_p4 = pnand %p1312_p0, %p256_p10  ;;  %s248_s30 = sshll.u32 %s238_s29, 4  ;;  %s1169_s30 = int_to_ptr.vmem [resolvable:$true] %s248_s30 }
  0x30   : > { %s902_s9 = scalar_lea.hbm %s1167_s25, 4096  ;;  %s907_s8 = scalar_lea.hbm %s1304_s1, 8192 }
  0x31   : > { %p903_p5 = scmp.ne.s32.totalorder %s1167_s25, %s902_s9  ;;  %p908_p11 = scmp.lt.u32.totalorder %s1167_s25, %s1304_s1 }
  0x32   : > { %p909_p13 = scmp.lt.u32.totalorder %s907_s8, %s902_s9  ;;  %p911_p2 = scmp.lt.u32.totalorder %s902_s9, %s1167_s25 }
  0x33   : > { %p905_p6 = pnand %p903_p5, %p874_p12 }
  0x34   : > { %p910_p1 = por %p909_p13, %p908_p11 }
  0x35   : > { %p906_p8 = pneg %p905_p6 }
  0x36   : > { %p912_p3 = por %p911_p2, %p910_p1 }
  0x38   : > { %p913_p10 = pnand %p912_p3, %p906_p8 }
  0x3a   : > { %916 = shalt.err (!%p913_p10)
}
  0x3b   : > { %s917_s13 = scalar_lea.vmem %s1169_s30, 4096  ;;  %s1022_s23 = smov [#allocation6]  }
  0x3c   : > { %p918_p0 = scmp.ne.s32.totalorder %s1169_s30, %s917_s13  ;;  %s922_s24 = sshll.u32 %s1022_s23, 4  ;;  %s923_s24 = int_to_ptr.vmem [resolvable:$false] %s922_s24 }
  0x3d   : > { %s924_s29 = scalar_lea.vmem %s923_s24, 8192  ;;  %p925_p7 = scmp.lt.s32.totalorder %s1169_s30, %s923_s24 }
  0x3e   : > { %p920_p5 = pnand %p918_p0, %p874_p12  ;;  %p926_p11 = scmp.lt.s32.totalorder %s924_s29, %s917_s13 }
  0x40   : > { %p921_p6 = pneg %p920_p5  ;;  %p927_p13 = por %p926_p11, %p925_p7 }
  0x42   : > { %p928_p1 = pnand %p927_p13, %p921_p6 }
  0x44   : > { %931 = shalt.err (!%p928_p1)
}
  0x45   : > { %s1023_s9 = smov 1024   ;;  %s1024_s11 = smov 32  }
  0x46   : > { %805 = dma.hbm_to_vmem [thread:$0]  (!%p1119_p9), %s1167_s25, 4096, %s1169_s30, %s235_s7, %s1023_s9, %s1019_s6, %s1024_s11  }
  0x47   : > { %260 = sbr.rel (%p1160_p4) target bundleno = 482 (0x1e2), region = 36  ;;  %s262_s5 = sand.u32 (!%p1160_p4), 1, %s1000_s16  }
  0x48   : > { %s769_s8 = sshll.u32 (!%p1160_p4), %s262_s5, 5  ;;  %s263_s12 = scalar_lea.sflag (!%p1160_p4), [#allocation4], %s262_s5 }
  0x49   : > { %s1201_s14 = scalar_lea.vmem (!%p1160_p4), [#allocation3], %s769_s8  ;;  %p1314_p7 = scmp.ne.s32.totalorder (!%p1160_p4), %s1310_s26, 0 }
  0x4e   : > { %983 = dma.done.wait (%p1314_p7), %s263_s12, 512  }
  0x4f   : > { %985 = vsyncadd (%p1314_p7), %s263_s12, 4294966784  ;;  %s770_s10 = sshll.u32 %s262_s5, 8  ;;  %s272_s13 = scalar_lea.sflag [#allocation7], %s262_s5 }
  0x50   : > { %s1207_s28 = scalar_lea.vmem [#allocation6], %s770_s10 }
  0x51   : > { %987 = dma.done.wait (%p1314_p7), %s272_s13, 4096  }
  0x52   : > { %989 = vsyncadd (%p1314_p7), %s272_s13, 4294963200  ;;  %p771_p9 = scmp.ne.s32.totalorder %s1008_s18, 0 }
  0x53   : > { %v1025_v0 = vmov (!%p771_p9), 0.0  }
  0x54   : > { %327 = sbr.rel (%p771_p9) target bundleno = 91 (0x5b), region = 48  ;;  %328 = vst [vmem:[#allocation2] sm:$0xff] (!%p771_p9), %v1025_v0  ;;  %329 = vst [vmem:[#allocation2 + $0x8] sm:$0xff] (!%p771_p9), %v1025_v0 }
  0x55   : > { %330 = vst [vmem:[#allocation2 + $0x10] sm:$0xff] (!%p771_p9), %v1025_v0  ;;  %331 = vst [vmem:[#allocation2 + $0x18] sm:$0xff] (!%p771_p9), %v1025_v0 }
  0x5b PF: > { %v337_v1 = vld [vmem:[%s1207_s28 + $0x8] sm:$0xff]  ;;  %v339_v2 = vld [vmem:[%s1207_s28 + $0x18] sm:$0xff]  ;;  %v336_v3 = vld [vmem:[%s1207_s28] sm:$0xff]  ;;  %p776_p12 = scmp.ne.s32.totalorder %s1008_s18, 1 }
  0x5c   : > { %v369_v4 = vunpack.c.l.s8.bf16 %v337_v1  ;;  %v373_v5 = vunpack.c.h.s8.bf16 %v337_v1  ;;  %v371_v6 = vunpack.c.l.s8.bf16 %v339_v2  ;;  %v375_v7 = vunpack.c.h.s8.bf16 %v339_v2  ;;  %v338_v8 = vld [vmem:[%s1207_s28 + $0x10] sm:$0xff]  ;;  %v341_v11 = vld [vmem:[%s1207_s28 + $0x28] sm:$0xff]  ;;  %v343_v12 = vld [vmem:[%s1207_s28 + $0x38] sm:$0xff] }
  0x5d   : > { %v368_v9 = vunpack.c.l.s8.bf16 %v336_v3  ;;  %v370_v10 = vunpack.c.l.s8.bf16 %v338_v8  ;;  %v372_v13 = vunpack.c.h.s8.bf16 %v336_v3  ;;  %v374_v14 = vunpack.c.h.s8.bf16 %v338_v8  ;;  %v868_v17 = vld [vmem:[%s1201_s14 + $0x4] ss:$16 sps:$4 sm:$0xff]   ;;  %v871_v20 = vld [vmem:[%s1201_s14 + $0xc] ss:$16 sps:$4 sm:$0xff]  }
  0x5e   : > { %456 = vmatprep.subr.bf16.mxu1 %v369_v4  ;;  %499 = vmatprep.subr.bf16.mxu0 %v371_v6  ;;  %v377_v15 = vunpack.c.l.s8.bf16 %v341_v11  ;;  %v379_v16 = vunpack.c.l.s8.bf16 %v343_v12  ;;  %v340_v18 = vld [vmem:[%s1207_s28 + $0x20] sm:$0xff]  ;;  %v342_v19 = vld [vmem:[%s1207_s28 + $0x30] sm:$0xff]  ;;  %v381_v23 = vunpack.c.h.s8.bf16 %v341_v11  ;;  %v383_v24 = vunpack.c.h.s8.bf16 %v343_v12  ;;  %v345_v25 = vld [vmem:[%s1207_s28 + $0x48] sm:$0xff] }
  0x5f   : > { %457 = vmatpush1.bf16.xpose.msra.mxu1 %v368_v9  ;;  %500 = vmatpush1.bf16.xpose.msra.mxu0 %v370_v10  ;;  %v376_v21 = vunpack.c.l.s8.bf16 %v340_v18  ;;  %v378_v22 = vunpack.c.l.s8.bf16 %v342_v19  ;;  %v347_v26 = vld [vmem:[%s1207_s28 + $0x58] sm:$0xff]  ;;  %v380_v27 = vunpack.c.h.s8.bf16 %v340_v18  ;;  %v382_v28 = vunpack.c.h.s8.bf16 %v342_v19  ;;  %v344_v31 = vld [vmem:[%s1207_s28 + $0x40] sm:$0xff]  ;;  %v346_v32 = vld [vmem:[%s1207_s28 + $0x50] sm:$0xff] }
  0x60   : > { %458 = vmatprep.subr.bf16.mxu1 %v373_v5  ;;  %501 = vmatprep.subr.bf16.mxu0 %v375_v7  ;;  %v385_v29 = vunpack.c.l.s8.bf16 %v345_v25  ;;  %v387_v30 = vunpack.c.l.s8.bf16 %v347_v26  ;;  %v384_v33 = vunpack.c.l.s8.bf16 %v344_v31  ;;  %v386_v34 = vunpack.c.l.s8.bf16 %v346_v32  ;;  %v349_v37 = vld [vmem:[%s1207_s28 + $0x68] sm:$0xff]  ;;  %v351_v38 = vld [vmem:[%s1207_s28 + $0x78] sm:$0xff]  ;;  %v348_v43 = vld [vmem:[%s1207_s28 + $0x60] sm:$0xff] }
  0x61   : > { %488 = vmatprep.mubr.bf16.mxu1 %v868_v17  ;;  %531 = vmatprep.mubr.bf16.mxu0 %v871_v20  ;;  %v389_v35 = vunpack.c.h.s8.bf16 %v345_v25  ;;  %v391_v36 = vunpack.c.h.s8.bf16 %v347_v26  ;;  %v388_v39 = vunpack.c.h.s8.bf16 %v344_v31  ;;  %v390_v40 = vunpack.c.h.s8.bf16 %v346_v32  ;;  %v350_v44 = vld [vmem:[%s1207_s28 + $0x70] sm:$0xff]  ;;  %v353_v49 = vld [vmem:[%s1207_s28 + $0x88] sm:$0xff]  ;;  %v355_v50 = vld [vmem:[%s1207_s28 + $0x98] sm:$0xff] }
  0x62   : > { %v393_v41 = vunpack.c.l.s8.bf16 %v349_v37  ;;  %v395_v42 = vunpack.c.l.s8.bf16 %v351_v38  ;;  %v392_v45 = vunpack.c.l.s8.bf16 %v348_v43  ;;  %v394_v46 = vunpack.c.l.s8.bf16 %v350_v44  ;;  %v352_v55 = vld [vmem:[%s1207_s28 + $0x80] sm:$0xff]  ;;  %v354_v56 = vld [vmem:[%s1207_s28 + $0x90] sm:$0xff]  ;;  %v357_v61 = vld [vmem:[%s1207_s28 + $0xa8] sm:$0xff] }
  0x63   : > { %v397_v47 = vunpack.c.h.s8.bf16 %v349_v37  ;;  %v399_v48 = vunpack.c.h.s8.bf16 %v351_v38  ;;  %v396_v51 = vunpack.c.h.s8.bf16 %v348_v43  ;;  %v398_v52 = vunpack.c.h.s8.bf16 %v350_v44  ;;  %v359_v62 = vld [vmem:[%s1207_s28 + $0xb8] sm:$0xff]  ;;  %v356_v3 = vld [vmem:[%s1207_s28 + $0xa0] sm:$0xff]  ;;  %v358_v4 = vld [vmem:[%s1207_s28 + $0xb0] sm:$0xff] }
  0x64   : > { %v401_v53 = vunpack.c.l.s8.bf16 %v353_v49  ;;  %v403_v54 = vunpack.c.l.s8.bf16 %v355_v50  ;;  %v400_v57 = vunpack.c.l.s8.bf16 %v352_v55  ;;  %v402_v58 = vunpack.c.l.s8.bf16 %v354_v56  ;;  %v361_v9 = vld [vmem:[%s1207_s28 + $0xc8] sm:$0xff]  ;;  %v363_v10 = vld [vmem:[%s1207_s28 + $0xd8] sm:$0xff]  ;;  %v432_v38 = vld [vmem:[#allocation2] sm:$0xff] }
  0x65   : > { %v405_v59 = vunpack.c.h.s8.bf16 %v353_v49  ;;  %v407_v60 = vunpack.c.h.s8.bf16 %v355_v50  ;;  %v404_v63 = vunpack.c.h.s8.bf16 %v352_v55  ;;  %v406_v0 = vunpack.c.h.s8.bf16 %v354_v56 }
  0x66   : > { %v409_v1 = vunpack.c.l.s8.bf16 %v357_v61  ;;  %v411_v2 = vunpack.c.l.s8.bf16 %v359_v62  ;;  %v408_v5 = vunpack.c.l.s8.bf16 %v356_v3  ;;  %v410_v6 = vunpack.c.l.s8.bf16 %v358_v4 }
  0x67   : > { %459 = vmatpush1.bf16.xpose.msra.mxu1 %v372_v13  ;;  %502 = vmatpush1.bf16.xpose.msra.mxu0 %v374_v14  ;;  %v413_v7 = vunpack.c.h.s8.bf16 %v357_v61  ;;  %v415_v8 = vunpack.c.h.s8.bf16 %v359_v62  ;;  %v412_v11 = vunpack.c.h.s8.bf16 %v356_v3  ;;  %v414_v12 = vunpack.c.h.s8.bf16 %v358_v4 }
  0x68   : > { %460 = vmatprep.subr.bf16.mxu1 %v377_v15  ;;  %503 = vmatprep.subr.bf16.mxu0 %v379_v16  ;;  %v417_v13 = vunpack.c.l.s8.bf16 %v361_v9  ;;  %v419_v14 = vunpack.c.l.s8.bf16 %v363_v10  ;;  %v360_v15 = vld [vmem:[%s1207_s28 + $0xc0] sm:$0xff]  ;;  %v362_v16 = vld [vmem:[%s1207_s28 + $0xd0] sm:$0xff]  ;;  %v421_v19 = vunpack.c.h.s8.bf16 %v361_v9  ;;  %v423_v20 = vunpack.c.h.s8.bf16 %v363_v10 }
  0x69   : > { %v416_v17 = vunpack.c.l.s8.bf16 %v360_v15  ;;  %v418_v18 = vunpack.c.l.s8.bf16 %v362_v16 }
  0x6f   : > { %461 = vmatpush1.bf16.xpose.msra.mxu1 %v376_v21  ;;  %504 = vmatpush1.bf16.xpose.msra.mxu0 %v378_v22  ;;  %v365_v21 = vld [vmem:[%s1207_s28 + $0xe8] sm:$0xff]  ;;  %v367_v22 = vld [vmem:[%s1207_s28 + $0xf8] sm:$0xff] }
  0x70   : > { %462 = vmatprep.subr.bf16.mxu1 %v381_v23  ;;  %505 = vmatprep.subr.bf16.mxu0 %v383_v24  ;;  %v420_v23 = vunpack.c.h.s8.bf16 %v360_v15  ;;  %v422_v24 = vunpack.c.h.s8.bf16 %v362_v16  ;;  %v425_v25 = vunpack.c.l.s8.bf16 %v365_v21  ;;  %v427_v26 = vunpack.c.l.s8.bf16 %v367_v22 }
  0x71   : > { %v429_v31 = vunpack.c.h.s8.bf16 %v365_v21  ;;  %v431_v32 = vunpack.c.h.s8.bf16 %v367_v22 }
  0x77   : > { %463 = vmatpush1.bf16.xpose.msra.mxu1 %v380_v27  ;;  %506 = vmatpush1.bf16.xpose.msra.mxu0 %v382_v28  ;;  %v364_v27 = vld [vmem:[%s1207_s28 + $0xe0] sm:$0xff]  ;;  %v366_v28 = vld [vmem:[%s1207_s28 + $0xf0] sm:$0xff] }
  0x78   : > { %464 = vmatprep.subr.bf16.mxu1 %v385_v29  ;;  %507 = vmatprep.subr.bf16.mxu0 %v387_v30  ;;  %v424_v29 = vunpack.c.l.s8.bf16 %v364_v27  ;;  %v426_v30 = vunpack.c.l.s8.bf16 %v366_v28 }
  0x7f   : > { %465 = vmatpush1.bf16.xpose.msra.mxu1 %v384_v33  ;;  %508 = vmatpush1.bf16.xpose.msra.mxu0 %v386_v34  ;;  %v428_v33 = vunpack.c.h.s8.bf16 %v364_v27  ;;  %v430_v34 = vunpack.c.h.s8.bf16 %v366_v28 }
  0x80   : > { %466 = vmatprep.subr.bf16.mxu1 %v389_v35  ;;  %509 = vmatprep.subr.bf16.mxu0 %v391_v36  ;;  %v866_v35 = vld [vmem:[%s1201_s14] ss:$16 sps:$4 sm:$0xff]   ;;  %v869_v36 = vld [vmem:[%s1201_s14 + $0x8] ss:$16 sps:$4 sm:$0xff]  }
  0x87   : > { %467 = vmatpush1.bf16.xpose.msra.mxu1 %v388_v39  ;;  %510 = vmatpush1.bf16.xpose.msra.mxu0 %v390_v40 }
  0x88   : > { %468 = vmatprep.subr.bf16.mxu1 %v393_v41  ;;  %511 = vmatprep.subr.bf16.mxu0 %v395_v42  ;;  %v433_v42 = vld [vmem:[#allocation2 + $0x8] sm:$0xff] }
  0x8f   : > { %469 = vmatpush1.bf16.xpose.msra.mxu1 %v392_v45  ;;  %512 = vmatpush1.bf16.xpose.msra.mxu0 %v394_v46  ;;  %v434_v46 = vld [vmem:[#allocation2 + $0x10] sm:$0xff] }
  0x90   : > { %470 = vmatprep.subr.bf16.mxu1 %v397_v47  ;;  %513 = vmatprep.subr.bf16.mxu0 %v399_v48 }
  0x97   : > { %471 = vmatpush1.bf16.xpose.msra.mxu1 %v396_v51  ;;  %514 = vmatpush1.bf16.xpose.msra.mxu0 %v398_v52  ;;  %v435_v51 = vld [vmem:[#allocation2 + $0x18] sm:$0xff] }
  0x98   : > { %472 = vmatprep.subr.bf16.mxu1 %v401_v53  ;;  %515 = vmatprep.subr.bf16.mxu0 %v403_v54 }
  0x9f   : > { %473 = vmatpush1.bf16.xpose.msra.mxu1 %v400_v57  ;;  %516 = vmatpush1.bf16.xpose.msra.mxu0 %v402_v58  ;;  %v558_v57 = vld [vmem:[%s1305_s2] sm:$0x3] (!%p776_p12)  ;;  %v561_v58 = vlaneseq (!%p776_p12) }
  0xa0   : > { %474 = vmatprep.subr.bf16.mxu1 %v405_v59  ;;  %517 = vmatprep.subr.bf16.mxu0 %v407_v60  ;;  %v583_v59 = vld [vmem:[%s1306_s3] sm:$0x3] (!%p776_p12)  ;;  %v559_v60 = vunpack.c.l.bf16 (!%p776_p12), %v558_v57 }
  0xa1   : > { %v562_v61 = vshrl.u32 (!%p776_p12), %v561_v58, 7  ;;  %v584_v62 = vunpack.c.l.bf16 (!%p776_p12), %v583_v59 }
  0xa7   : > { %475 = vmatpush1.bf16.xpose.msra.mxu1 %v404_v63  ;;  %518 = vmatpush1.bf16.xpose.msra.mxu0 %v406_v0  ;;  %v563_v63 = vsub.s32 (!%p776_p12), 0, %v562_v61  ;;  %v567_v0 = vsub.s32 (!%p776_p12), 2, %v562_v61 }
  0xa8   : > { %476 = vmatprep.subr.bf16.mxu1 %v409_v1  ;;  %519 = vmatprep.subr.bf16.mxu0 %v411_v2 }
  0xa9   : > { %v564_v2 = vrot.slane (!%p776_p12), %v559_v60, %v563_v63  ;;  %v568_v3 = vrot.slane (!%p776_p12), %v559_v60, %v567_v0  ;;  %v589_v4 = vrot.slane (!%p776_p12), %v584_v62, %v563_v63 }
  0xab   : > { %v574_v9 = vrot.slane (!%p776_p12), %v564_v2, %v563_v63  ;;  %v578_v10 = vrot.slane (!%p776_p12), %v568_v3, %v563_v63 }
  0xaf   : > { %477 = vmatpush1.bf16.xpose.msra.mxu1 %v408_v5  ;;  %520 = vmatpush1.bf16.xpose.msra.mxu0 %v410_v6  ;;  %v593_v5 = vrot.slane (!%p776_p12), %v584_v62, %v567_v0 }
  0xb0   : > { %478 = vmatprep.subr.bf16.mxu1 %v413_v7  ;;  %521 = vmatprep.subr.bf16.mxu0 %v415_v8 }
  0xb7   : > { %479 = vmatpush1.bf16.xpose.msra.mxu1 %v412_v11  ;;  %522 = vmatpush1.bf16.xpose.msra.mxu0 %v414_v12  ;;  %v599_v11 = vrot.slane (!%p776_p12), %v589_v4, %v563_v63  ;;  %v603_v12 = vrot.slane (!%p776_p12), %v593_v5, %v563_v63 }
  0xb8   : > { %480 = vmatprep.subr.bf16.mxu1 %v417_v13  ;;  %523 = vmatprep.subr.bf16.mxu0 %v419_v14 }
  0xbf   : > { %481 = vmatpush1.bf16.xpose.msra.mxu1 %v416_v17  ;;  %524 = vmatpush1.bf16.xpose.msra.mxu0 %v418_v18 }
  0xc0   : > { %482 = vmatprep.subr.bf16.mxu1 %v421_v19  ;;  %525 = vmatprep.subr.bf16.mxu0 %v423_v20 }
  0xc7   : > { %483 = vmatpush1.bf16.xpose.msra.mxu1 %v420_v23  ;;  %526 = vmatpush1.bf16.xpose.msra.mxu0 %v422_v24 }
  0xc8   : > { %484 = vmatprep.subr.bf16.mxu1 %v425_v25  ;;  %527 = vmatprep.subr.bf16.mxu0 %v427_v26 }
  0xcf   : > { %485 = vmatpush1.bf16.xpose.msra.mxu1 %v424_v29  ;;  %528 = vmatpush1.bf16.xpose.msra.mxu0 %v426_v30 }
  0xd0   : > { %486 = vmatprep.subr.bf16.mxu1 %v429_v31  ;;  %529 = vmatprep.subr.bf16.mxu0 %v431_v32 }
  0xd7   : > { %487 = vmatpush1.bf16.xpose.msra.mxu1 %v428_v33  ;;  %530 = vmatpush1.bf16.xpose.msra.mxu0 %v430_v34 }
  0xde   : > { %489 = vmatmul.mubr.bf16.vlgmr.msra.gmra.mrb[0].mxu1 %v866_v35  ;;  %532 = vmatmul.mubr.bf16.vlgmr.msra.gmra.mrb[0].mxu0 %v869_v36 }
 0x1b1   : > { %v490_v37 = vpop.f32.mrb[0].mxu1  ;;  %v533_v39 = vpop.f32.mrb[0].mxu0 }
 0x1b2   : > { %v534_v40 = vadd.f32 %v533_v39, %v490_v37  ;;  %v492_v41 = vpop.f32.mrb[1].mxu1  ;;  %v535_v43 = vpop.f32.mrb[1].mxu0 }
 0x1b3   : > { %v536_v44 = vadd.f32 %v535_v43, %v492_v41  ;;  %v494_v45 = vpop.f32.mrb[2].mxu1  ;;  %v537_v47 = vpop.f32.mrb[2].mxu0  ;;  %553 = sbr.rel (%p776_p12) target bundleno = 456 (0x1c8), region = 52 }
 0x1b4   : > { %v542_v48 = vadd.f32 %v534_v40, %v432_v38  ;;  %v538_v49 = vadd.f32 %v537_v47, %v494_v45  ;;  %v496_v50 = vpop.f32.mrb[3].mxu1  ;;  %v539_v52 = vpop.f32.mrb[3].mxu0 }
 0x1b5   : > { %v543_v53 = vadd.f32 %v536_v44, %v433_v42  ;;  %v540_v54 = vadd.f32 %v539_v52, %v496_v50 }
 0x1b6   : > { %546 = vst [vmem:[#allocation2] sm:$0xff] %v542_v48  ;;  %v544_v55 = vadd.f32 %v538_v49, %v434_v46 }
 0x1b7   : > { %547 = vst [vmem:[#allocation2 + $0x8] sm:$0xff] %v543_v53  ;;  %v545_v56 = vadd.f32 %v540_v54, %v435_v51 }
 0x1b8   : > { %548 = vst [vmem:[#allocation2 + $0x10] sm:$0xff] %v544_v55 }
 0x1b9   : > { %549 = vst [vmem:[#allocation2 + $0x18] sm:$0xff] %v545_v56 }
 0x1bd   : > { %v554_v1 = vld [vmem:[#allocation2] sm:$0xff] }
 0x1be   : > { %v555_v6 = vld [vmem:[#allocation2 + $0x8] sm:$0xff]  ;;  %v579_v13 = vmul.f32 %v574_v9, %v554_v1 }
 0x1bf   : > { %v556_v7 = vld [vmem:[#allocation2 + $0x10] sm:$0xff]  ;;  %v580_v14 = vmul.f32 %v578_v10, %v555_v6 }
 0x1c0   : > { %v557_v8 = vld [vmem:[#allocation2 + $0x18] sm:$0xff]  ;;  %v581_v15 = vmul.f32 %v574_v9, %v556_v7  ;;  %v604_v17 = vadd.f32 %v599_v11, %v579_v13 }
 0x1c1   : > { %v582_v16 = vmul.f32 %v578_v10, %v557_v8  ;;  %v605_v18 = vadd.f32 %v603_v12, %v580_v14 }
 0x1c2   : > { %v606_v19 = vadd.f32 %v599_v11, %v581_v15 }
 0x1c3   : > { %v607_v20 = vadd.f32 %v603_v12, %v582_v16  ;;  %v785_v21 = vpack.c.bf16 %v605_v18, %v604_v17 }
 0x1c5   : > { %v786_v22 = vpack.c.bf16 %v607_v20, %v606_v19  ;;  %620 = vst [vmem:[#allocation8] sm:$0xff] %v785_v21 }
 0x1c7   : > { %621 = vst [vmem:[#allocation8 + $0x8] sm:$0xff] %v786_v22 }
 0x1c8 PF: > { %p1259_p4 = scmp.eq.s32.totalorder %s757_s21, 1  ;;  %s1026_s30 = smov [#allocation8]  }
 0x1c9   : > { %s634_s7 = sshll.u32 %s1026_s30, 4  ;;  %s635_s7 = int_to_ptr.vmem [resolvable:$true] %s634_s7 }
 0x1ca   : > { %s932_s23 = scalar_lea.vmem %s635_s7, 256  ;;  %p939_p10 = scmp.lt.s32.totalorder %s635_s7, %s635_s7 }
 0x1cb   : > { %p933_p8 = scmp.ne.s32.totalorder %s635_s7, %s932_s23  ;;  %p940_p0 = scmp.lt.s32.totalorder %s932_s23, %s932_s23 }
 0x1cd   : > { %p934_p2 = pnand %p933_p8, %p1259_p4  ;;  %p941_p5 = por %p940_p0, %p939_p10 }
 0x1cf   : > { %p935_p3 = pneg %p934_p2 }
 0x1d1   : > { %p942_p6 = pnand %p941_p5, %p935_p3 }
 0x1d3   : > { %945 = shalt.err (!%p942_p6)
}
 0x1d4   : > { %s946_s21 = scalar_lea.hbm %s1307_s4, 256 }
 0x1d5   : > { %p947_p11 = scmp.ne.s32.totalorder %s1307_s4, %s946_s21  ;;  %p952_p7 = scmp.lt.u32.totalorder %s946_s21, %s1307_s4 }
 0x1d7   : > { %p948_p13 = pnand %p947_p11, %p1259_p4 }
 0x1d9   : > { %p949_p1 = pneg %p948_p13 }
 0x1db   : > { %p954_p9 = pnand %p952_p7, %p949_p1 }
 0x1dd   : > { %957 = shalt.err (!%p954_p9)
}
 0x1de   : > { %s1027_s12 = smov 128   ;;  %s1028_s14 = smov 8  }
 0x1df   : > { %796 = dma.vmem_to_hbm [thread:$0]  (%p1259_p4), %s635_s7, 256, %s1307_s4, [#allocation5], %s1027_s12, %s1027_s12, %s1028_s14  }
 0x1e0   : > { %991 = dma.done.wait (%p1259_p4), [#allocation5], 256  }
 0x1e1   : > { %993 = vsyncadd (%p1259_p4), [#allocation5], 4294967040 }
 0x1e2 PF: > { %s21_s20 = sadd.s32 1, %s1016_s20   ;;  %s1316_s15 = smov %s1000_s16 }
 0x1e3   : > { %p18_p12 = scmp.ge.s32.totalorder %s21_s20, 4   ;;  %s1317_s16 = smov %s1004_s17 }
 0x1e4   : > { %s1318_s17 = smov %s1105_s27  ;;  %s1319_s18 = smov %s1012_s19 }
 0x1e5   : > { %s1320_s19 = smov %s1322_s22  ;;  %20 = sbr.rel (!%p18_p12) target bundleno = 7 (0x7), region = 101 }
 0x1ec   :  { %650 = vsyncpa [#allocation4], 1 }
 0x1ed   :  { %652 = vsyncpa [#allocation4 + $0x1], 1 }
 0x1ee   :  { %653 = vsyncpa [#allocation7], 1 }
 0x1ef   :  { %655 = vsyncpa [#allocation7 + $0x1], 1 }
 0x1f0   :  { %656 = vsyncpa [#allocation5], 1 }
 0x1f1   :  { %658 = vsyncpa [#allocation5 + $0x1], 1 }

</bundles_post_ra>
